<compile_context>
chip_gen: v6e
topology: v6e:2x2x1
jax: 0.10.0
libtpu: 0.0.40
codegen_flags: <defaults>
</compile_context>

<pallas_src>
import functools

import jax
import jax.numpy as jnp
from jax import lax
from jax.experimental import pallas as pl
from jax.experimental.pallas import tpu as pltpu


def _round_up(x, m):
    return ((x + m - 1) // m) * m


def _cdiv(a, b):
    return -(-a // b)


def _tpu_defaults():
    """Per-generation tiling / VMEM / elementwise-dtype defaults."""
    kind = ""
    try:
        kind = jax.devices()[0].device_kind.lower()
    except Exception:
        pass
    if ("v7" in kind) or ("7x" in kind):
        # v7x: 64 MiB physical VMEM per TC, 2 TCs/chip -> leave headroom and
        # keep >=4 grid steps so both TensorCores get work + DMA overlap.
        return dict(vmem_limit=48 * 1024 * 1024, min_steps=4, tile_m=512,
                    ew_dtype=jnp.bfloat16)
    if "v6" in kind:
        # v6e: 128 MiB VMEM, single TC -> fewer, bigger streaming tiles.
        return dict(vmem_limit=96 * 1024 * 1024, min_steps=1, tile_m=1024,
                    ew_dtype=jnp.bfloat16)
    if any(t in kind for t in ("v2", "v3", "v4", "v5")):
        # v5e and older: 128 MiB VMEM but no bf16 VPU/EUP -> f32 elementwise.
        return dict(vmem_limit=96 * 1024 * 1024, min_steps=1, tile_m=1024,
                    ew_dtype=jnp.float32)
    # Unknown generation: conservative middle ground.
    return dict(vmem_limit=64 * 1024 * 1024, min_steps=2, tile_m=512,
                ew_dtype=jnp.float32)


def _gelu(x, approximate):
    if approximate:
        # tanh-approximate GELU: tanh lowers to the EUP (its own VLIW slot),
        # removing the ~15-25-op erf polynomial from the VALU.
        c0 = jnp.asarray(0.7978845608028654, x.dtype)   # sqrt(2/pi)
        c1 = jnp.asarray(0.044715, x.dtype)
        return 0.5 * x * (1.0 + jnp.tanh(c0 * (x + c1 * x * x * x)))
    # Exact (erf) GELU, matching torch.nn.GELU() default (approximate='none').
    inv_sqrt2 = jnp.asarray(0.7071067811865475, x.dtype)
    return 0.5 * x * (1.0 + lax.erf(x * inv_sqrt2))


# --------------------------- kernels ---------------------------------------


def _gated_ffn_kernel_fused(x_ref, wgm_ref, bgm_ref, w2_ref, b2_ref, o_ref, *,
                            hidden, ew_dtype, approx_gelu):
    """Path for hidden % 128 == 0: one fused [Wg | Wm] matmul, vreg-aligned split."""
    x = x_ref[...]                                              # (tm, C_in), MXU dtype
    gm = jnp.dot(x, wgm_ref[...],
                 preferred_element_type=jnp.float32) + bgm_ref[...]
    gm = gm.astype(ew_dtype)                                    # (tm, 2*hidden)
    gate = gm[:, :hidden]                                       # 128-lane aligned slice
    main = gm[:, hidden:]
    h = _gelu(gate, approx_gelu) * main                         # (tm, hidden)
    out = jnp.dot(h.astype(w2_ref.dtype), w2_ref[...],
                  preferred_element_type=jnp.float32) + b2_ref[...]
    o_ref[...] = out.astype(o_ref.dtype)


def _gated_ffn_kernel_split(x_ref, wg_ref, bg_ref, wm_ref, bm_ref, w2_ref,
                            b2_ref, o_ref, *, ew_dtype, approx_gelu):
    """Path for hidden % 128 != 0: two dots (cheaper than padding both halves)."""
    x = x_ref[...]                                              # (tm, C_in), MXU dtype
    gate = jnp.dot(x, wg_ref[...],
                   preferred_element_type=jnp.float32) + bg_ref[...]
    main = jnp.dot(x, wm_ref[...],
                   preferred_element_type=jnp.float32) + bm_ref[...]
    gate = gate.astype(ew_dtype)
    main = main.astype(ew_dtype)
    h = _gelu(gate, approx_gelu) * main                         # (tm, hidden)
    out = jnp.dot(h.astype(w2_ref.dtype), w2_ref[...],
                  preferred_element_type=jnp.float32) + b2_ref[...]
    o_ref[...] = out.astype(o_ref.dtype)


# --------------------------- wrapper ----------------------------------------


def prepare_gated_ffn_params(wg, bg, wm, bm, w2, b2, *, matmul_dtype=jnp.bfloat16):
    """One-time weight preprocessing, hoisted out of the per-call path.

    Weights stored (in, out), i.e. torch weight.T. Pass matmul_dtype=jnp.float32
    for strict parity with a f32 torch module (at 2x the weight/activation DMA).
    """
    c_in, hidden = wg.shape
    c_out = w2.shape[1]
    fuse = (hidden % 128 == 0)

    # Zero-pad output channels to a lane-dense multiple of 128 (dense vst).
    c_out_p = _round_up(c_out, 128)
    w2_p = jnp.pad(w2, ((0, 0), (0, c_out_p - c_out))) if c_out_p != c_out else w2
    b2_p = jnp.pad(b2, ((0, c_out_p - c_out),)) if c_out_p != c_out else b2

    params = dict(
        c_in=c_in, hidden=hidden, c_out=c_out, c_out_p=c_out_p, fuse=fuse,
        matmul_dtype=matmul_dtype,
        w2=jnp.asarray(w2_p, matmul_dtype),
        b2=jnp.asarray(b2_p, jnp.float32).reshape(1, c_out_p),
    )
    if fuse:
        params["wgm"] = jnp.concatenate([wg, wm], axis=1).astype(matmul_dtype)
        params["bgm"] = jnp.concatenate([bg, bm], axis=0).astype(
            jnp.float32).reshape(1, 2 * hidden)
    else:
        params["wg"] = jnp.asarray(wg, matmul_dtype)
        params["bg"] = jnp.asarray(bg, jnp.float32).reshape(1, hidden)
        params["wm"] = jnp.asarray(wm, matmul_dtype)
        params["bm"] = jnp.asarray(bm, jnp.float32).reshape(1, hidden)
    return params


def gated_ffn_apply(x_nhwc, params, *, tile_m=None, approximate_gelu=True,
                    out_dtype=None):
    """GatedFFN forward (inference; nn.Dropout is identity at drop=0.0)."""
    B, H, W, c_in = x_nhwc.shape
    assert c_in == params["c_in"], "channel mismatch with prepared params"
    hidden = params["hidden"]
    c_out, c_out_p = params["c_out"], params["c_out_p"]
    matmul_dtype = params["matmul_dtype"]
    if out_dtype is None:
        out_dtype = x_nhwc.dtype
    N = B * H * W

    cfg = _tpu_defaults()
    # Exact erf GELU is kept in f32 regardless of generation.
    ew_dtype = cfg["ew_dtype"] if approximate_gelu else jnp.float32

    # --- token-dim tiling: cap so the grid has >= min_steps steps, round to a
    # multiple of 128 when possible (8 minimum), pad N only when needed ---
    t = tile_m if tile_m is not None else cfg["tile_m"]
    t = min(t, N)
    if cfg["min_steps"] > 1:
        t = min(t, _cdiv(N, cfg["min_steps"]))
    t = (t // 128) * 128 if t >= 128 else _round_up(max(t, 8), 8)
    N_p = _round_up(N, t)
    grid = (N_p // t,)

    # Activations cast to the MXU dtype in the wrapper: halves x DMA + buffers.
    x2 = x_nhwc.reshape(N, c_in).astype(matmul_dtype)
    if N_p != N:
        x2 = jnp.pad(x2, ((0, N_p - N), (0, 0)))

    xw_bytes = jnp.dtype(matmul_dtype).itemsize
    o_bytes = jnp.dtype(out_dtype).itemsize
    cost = pl.CostEstimate(
        flops=2 * N_p * (c_in * 2 * hidden + hidden * c_out_p),
        transcendentals=(N_p * hidden) if approximate_gelu else 0,
        bytes_accessed=(N_p * c_in * xw_bytes + N_p * c_out_p * o_bytes
                        + (c_in * 2 * hidden + hidden * c_out_p) * xw_bytes),
    )

    if params["fuse"]:
        kernel = functools.partial(_gated_ffn_kernel_fused, hidden=hidden,
                                   ew_dtype=ew_dtype,
                                   approx_gelu=approximate_gelu)
        operands = (x2, params["wgm"], params["bgm"], params["w2"], params["b2"])
        in_specs = [
            pl.BlockSpec((t, c_in), lambda i: (i, 0)),            # x tile
            pl.BlockSpec((c_in, 2 * hidden), lambda i: (0, 0)),   # [Wg | Wm]
            pl.BlockSpec((1, 2 * hidden), lambda i: (0, 0)),      # [bg | bm]
            pl.BlockSpec((hidden, c_out_p), lambda i: (0, 0)),    # W2 (padded)
            pl.BlockSpec((1, c_out_p), lambda i: (0, 0)),         # b2 (padded)
        ]
    else:
        kernel = functools.partial(_gated_ffn_kernel_split, ew_dtype=ew_dtype,
                                   approx_gelu=approximate_gelu)
        operands = (x2, params["wg"], params["bg"], params["wm"], params["bm"],
                    params["w2"], params["b2"])
        in_specs = [
            pl.BlockSpec((t, c_in), lambda i: (i, 0)),            # x tile
            pl.BlockSpec((c_in, hidden), lambda i: (0, 0)),       # Wg
            pl.BlockSpec((1, hidden), lambda i: (0, 0)),          # bg
            pl.BlockSpec((c_in, hidden), lambda i: (0, 0)),       # Wm
            pl.BlockSpec((1, hidden), lambda i: (0, 0)),          # bm
            pl.BlockSpec((hidden, c_out_p), lambda i: (0, 0)),    # W2 (padded)
            pl.BlockSpec((1, c_out_p), lambda i: (0, 0)),         # b2 (padded)
        ]

    out = pl.pallas_call(
        kernel,
        out_shape=jax.ShapeDtypeStruct((N_p, c_out_p), out_dtype),
        grid_spec=pltpu.PrefetchScalarGridSpec(
            num_scalar_prefetch=0,
            grid=grid,
            in_specs=in_specs,
            out_specs=pl.BlockSpec((t, c_out_p), lambda i: (i, 0)),
        ),
        compiler_params=pltpu.CompilerParams(
            dimension_semantics=("parallel",),
            vmem_limit_bytes=cfg["vmem_limit"],
        ),
        cost_estimate=cost,
    )(*operands)

    # Strip token / output-channel padding only when present; fold the reshape.
    if N_p != N or c_out_p != c_out:
        out = out[:N, :c_out]
    return out.reshape(B, H, W, c_out)


def gated_ffn_reference(x_nhwc, wg, bg, wm, bm, w2, b2):
    gate = jnp.einsum("bhwc,cf->bhwf", x_nhwc, wg) + bg
    main = jnp.einsum("bhwc,cf->bhwf", x_nhwc, wm) + bm
    h = jax.nn.gelu(gate, approximate=False) * main
    return jnp.einsum("bhwf,fc->bhwc", h, w2) + b2


if __name__ == "__main__":
    key = jax.random.PRNGKey(0)

    def run_case(B, H, W, c_in, mlp_ratio, case_key):
        hidden = int(c_in * mlp_ratio)
        c_out = c_in
        ks = jax.random.split(case_key, 7)
        x = jax.random.normal(ks[0], (B, H, W, c_in), jnp.float32)
        # Deterministic synthetic parameters (stored transposed: (in, out)).
        wg = 0.02 * jax.random.normal(ks[1], (c_in, hidden), jnp.float32)
        bg = 0.01 * jax.random.normal(ks[2], (hidden,), jnp.float32)
        wm = 0.02 * jax.random.normal(ks[3], (c_in, hidden), jnp.float32)
        bm = 0.01 * jax.random.normal(ks[4], (hidden,), jnp.float32)
        w2 = 0.02 * jax.random.normal(ks[5], (hidden, c_out), jnp.float32)
        b2 = 0.01 * jax.random.normal(ks[6], (c_out,), jnp.float32)

        # One-time weight preprocessing (cached across forward passes).
        params = prepare_gated_ffn_params(wg, bg, wm, bm, w2, b2)
        out = gated_ffn_apply(x, params)
        out = jax.block_until_ready(out)

        ref = gated_ffn_reference(x, wg, bg, wm, bm, w2, b2)
        assert out.shape == (B, H, W, c_out)
        # bf16 MXU operands + tanh-GELU vs. f32 exact reference.
        assert jnp.allclose(out, ref, atol=1e-2, rtol=1e-2), "mismatch vs reference"

    k1, k2 = jax.random.split(key)
    # AetherBlock-like: in_features=32, mlp_ratio=2.0 -> hidden=64 (split path).
    run_case(2, 16, 16, 32, 2.0, k1)
    # hidden=128 exercises the fused, vreg-aligned gate|main path.
    run_case(2, 16, 16, 64, 2.0, k2)

    print("KERNEL_OK")
</pallas_src>

<mosaic_0001>
module attributes {stable_mosaic.version = 11 : i64} {
  func.func @_gated_ffn_kernel_split(%arg0: i32, %arg1: memref<256x32xbf16, #tpu.memory_space<vmem>>, %arg2: memref<32x64xbf16, #tpu.memory_space<vmem>>, %arg3: memref<1x64xf32, #tpu.memory_space<vmem>>, %arg4: memref<32x64xbf16, #tpu.memory_space<vmem>>, %arg5: memref<1x64xf32, #tpu.memory_space<vmem>>, %arg6: memref<64x128xbf16, #tpu.memory_space<vmem>>, %arg7: memref<1x128xf32, #tpu.memory_space<vmem>>, %arg8: memref<256x128xf32, #tpu.memory_space<vmem>>) attributes {dimension_semantics = [#tpu.dimension_semantics<parallel>], iteration_bounds = array<i64: 2>, scalar_prefetch = 0 : i64, scratch_operands = 0 : i64, tpu.core_type = #tpu.core_type<tc>, window_params = [{transform_indices = @transform_0, window_bounds = array<i64: 256, 32>}, {pipeline_mode = #tpu.pipeline_mode<synchronous>, transform_indices = @transform_1, window_bounds = array<i64: 32, 64>}, {pipeline_mode = #tpu.pipeline_mode<synchronous>, transform_indices = @transform_2, window_bounds = array<i64: 1, 64>}, {pipeline_mode = #tpu.pipeline_mode<synchronous>, transform_indices = @transform_3, window_bounds = array<i64: 32, 64>}, {pipeline_mode = #tpu.pipeline_mode<synchronous>, transform_indices = @transform_4, window_bounds = array<i64: 1, 64>}, {pipeline_mode = #tpu.pipeline_mode<synchronous>, transform_indices = @transform_5, window_bounds = array<i64: 64, 128>}, {pipeline_mode = #tpu.pipeline_mode<synchronous>, transform_indices = @transform_6, window_bounds = array<i64: 1, 128>}, {transform_indices = @transform_7, window_bounds = array<i64: 256, 128>}]} {
    %c0 = arith.constant 0 : index
    %c0_0 = arith.constant 0 : index
    %0 = vector.load %arg1[%c0, %c0_0] : memref<256x32xbf16, #tpu.memory_space<vmem>>, vector<256x32xbf16>
    %c0_1 = arith.constant 0 : index
    %c0_2 = arith.constant 0 : index
    %1 = vector.load %arg2[%c0_1, %c0_2] : memref<32x64xbf16, #tpu.memory_space<vmem>>, vector<32x64xbf16>
    %cst = arith.constant dense<0.000000e+00> : vector<256x64xf32>
    %2 = tpu.matmul %0, %1, %cst {dimension_numbers = #tpu.dot_dimension_numbers<[1], [0], [0], [1], [0, 0, 1, 1], [], []>} : vector<256x32xbf16>, vector<32x64xbf16>, vector<256x64xf32> -> vector<256x64xf32>
    %c0_3 = arith.constant 0 : index
    %c0_4 = arith.constant 0 : index
    %3 = vector.load %arg3[%c0_3, %c0_4] : memref<1x64xf32, #tpu.memory_space<vmem>>, vector<1x64xf32>
    %4 = vector.broadcast %3 : vector<1x64xf32> to vector<256x64xf32>
    %5 = arith.addf %2, %4 : vector<256x64xf32>
    %c0_5 = arith.constant 0 : index
    %c0_6 = arith.constant 0 : index
    %6 = vector.load %arg4[%c0_5, %c0_6] : memref<32x64xbf16, #tpu.memory_space<vmem>>, vector<32x64xbf16>
    %cst_7 = arith.constant dense<0.000000e+00> : vector<256x64xf32>
    %7 = tpu.matmul %0, %6, %cst_7 {dimension_numbers = #tpu.dot_dimension_numbers<[1], [0], [0], [1], [0, 0, 1, 1], [], []>} : vector<256x32xbf16>, vector<32x64xbf16>, vector<256x64xf32> -> vector<256x64xf32>
    %c0_8 = arith.constant 0 : index
    %c0_9 = arith.constant 0 : index
    %8 = vector.load %arg5[%c0_8, %c0_9] : memref<1x64xf32, #tpu.memory_space<vmem>>, vector<1x64xf32>
    %9 = vector.broadcast %8 : vector<1x64xf32> to vector<256x64xf32>
    %10 = arith.addf %7, %9 : vector<256x64xf32>
    %cst_10 = arith.constant 5.000000e-01 : f32
    %11 = vector.broadcast %cst_10 : f32 to vector<256x64xf32>
    %12 = arith.mulf %11, %5 : vector<256x64xf32>
    %cst_11 = arith.constant 4.471500e-02 : f32
    %13 = vector.broadcast %cst_11 : f32 to vector<256x64xf32>
    %14 = arith.mulf %13, %5 : vector<256x64xf32>
    %15 = arith.mulf %14, %5 : vector<256x64xf32>
    %16 = arith.mulf %15, %5 : vector<256x64xf32>
    %17 = arith.addf %5, %16 : vector<256x64xf32>
    %cst_12 = arith.constant 0.797884583 : f32
    %18 = vector.broadcast %cst_12 : f32 to vector<256x64xf32>
    %19 = arith.mulf %18, %17 : vector<256x64xf32>
    %20 = math.tanh %19 : vector<256x64xf32>
    %cst_13 = arith.constant 1.000000e+00 : f32
    %21 = vector.broadcast %cst_13 : f32 to vector<256x64xf32>
    %22 = arith.addf %21, %20 : vector<256x64xf32>
    %23 = arith.mulf %12, %22 : vector<256x64xf32>
    %24 = arith.mulf %23, %10 : vector<256x64xf32>
    %25 = arith.truncf %24 : vector<256x64xf32> to vector<256x64xbf16>
    %c0_14 = arith.constant 0 : index
    %c0_15 = arith.constant 0 : index
    %26 = vector.load %arg6[%c0_14, %c0_15] : memref<64x128xbf16, #tpu.memory_space<vmem>>, vector<64x128xbf16>
    %cst_16 = arith.constant dense<0.000000e+00> : vector<256x128xf32>
    %27 = tpu.matmul %25, %26, %cst_16 {dimension_numbers = #tpu.dot_dimension_numbers<[1], [0], [0], [1], [0, 0, 1, 1], [], []>} : vector<256x64xbf16>, vector<64x128xbf16>, vector<256x128xf32> -> vector<256x128xf32>
    %c0_17 = arith.constant 0 : index
    %c0_18 = arith.constant 0 : index
    %28 = vector.load %arg7[%c0_17, %c0_18] : memref<1x128xf32, #tpu.memory_space<vmem>>, vector<1x128xf32>
    %29 = vector.broadcast %28 : vector<1x128xf32> to vector<256x128xf32>
    %30 = arith.addf %27, %29 : vector<256x128xf32>
    %c0_19 = arith.constant 0 : index
    %c0_20 = arith.constant 0 : index
    %31 = vector.load %arg8[%c0_19, %c0_20] : memref<256x128xf32, #tpu.memory_space<vmem>>, vector<256x128xf32>
    tpu.vector_store %arg8[%c0_19, %c0_20], %30 {strides = array<i32>} : memref<256x128xf32, #tpu.memory_space<vmem>>, vector<256x128xf32>,
    return
  }
  func.func @transform_0(%arg0: i32) -> (i32, i32) {
    %c0_i32 = arith.constant 0 : i32
    %c0_i32_0 = arith.constant 0 : i32
    return %arg0, %c0_i32 : i32, i32
  }
  func.func @transform_1(%arg0: i32) -> (i32, i32) {
    %c0_i32 = arith.constant 0 : i32
    %c0_i32_0 = arith.constant 0 : i32
    %c0_i32_1 = arith.constant 0 : i32
    return %c0_i32, %c0_i32_0 : i32, i32
  }
  func.func @transform_2(%arg0: i32) -> (i32, i32) {
    %c0_i32 = arith.constant 0 : i32
    %c0_i32_0 = arith.constant 0 : i32
    %c0_i32_1 = arith.constant 0 : i32
    return %c0_i32, %c0_i32_0 : i32, i32
  }
  func.func @transform_3(%arg0: i32) -> (i32, i32) {
    %c0_i32 = arith.constant 0 : i32
    %c0_i32_0 = arith.constant 0 : i32
    %c0_i32_1 = arith.constant 0 : i32
    return %c0_i32, %c0_i32_0 : i32, i32
  }
  func.func @transform_4(%arg0: i32) -> (i32, i32) {
    %c0_i32 = arith.constant 0 : i32
    %c0_i32_0 = arith.constant 0 : i32
    %c0_i32_1 = arith.constant 0 : i32
    return %c0_i32, %c0_i32_0 : i32, i32
  }
  func.func @transform_5(%arg0: i32) -> (i32, i32) {
    %c0_i32 = arith.constant 0 : i32
    %c0_i32_0 = arith.constant 0 : i32
    %c0_i32_1 = arith.constant 0 : i32
    return %c0_i32, %c0_i32_0 : i32, i32
  }
  func.func @transform_6(%arg0: i32) -> (i32, i32) {
    %c0_i32 = arith.constant 0 : i32
    %c0_i32_0 = arith.constant 0 : i32
    %c0_i32_1 = arith.constant 0 : i32
    return %c0_i32, %c0_i32_0 : i32, i32
  }
  func.func @transform_7(%arg0: i32) -> (i32, i32) {
    %c0_i32 = arith.constant 0 : i32
    %c0_i32_0 = arith.constant 0 : i32
    return %arg0, %c0_i32 : i32, i32
  }
}

</mosaic_0001>

<bundles_post_ra>
// kernel: tpu_custom_call.1
= control target key start
LH: loop header
LB: loop body
LE: loop exit
PB: predicated region body
PF: predicated region fallthrough
CT: control target
= control target key end

     0   :  { %12 = vsyncpa [#allocation3], 0  ;;  %s2643_s0 = inlined_call_operand.vmem [shape: bf16[512,32], index: 0, kind: input, shape index: {}]   ;;  %s2644_s1 = inlined_call_operand.vmem [shape: bf16[32,64], index: 1, kind: input, shape index: {}]   ;;  %s2645_s2 = inlined_call_operand.vmem [shape: f32[1,64], index: 2, kind: input, shape index: {}]   ;;  %s2646_s3 = inlined_call_operand.vmem [shape: bf16[32,64], index: 3, kind: input, shape index: {}]   ;;  %s2647_s4 = inlined_call_operand.vmem [shape: f32[1,64], index: 4, kind: input, shape index: {}]   ;;  %s2648_s5 = inlined_call_operand.vmem [shape: bf16[64,128], index: 5, kind: input, shape index: {}]   ;;  %s2649_s6 = inlined_call_operand.vmem [shape: f32[1,128], index: 6, kind: input, shape index: {}]   ;;  %s2650_s7 = inlined_call_operand.hbm [shape: f32[512,128], index: 7, kind: output, shape index: {}]  }
   0x1   :  { %14 = vsyncpa [#allocation3 + $0x1], 0  ;;  %s1997_s24 = smov 0   ;;  %s1999_s25 = smov 0  }
   0x2   :  { %s2001_s26 = smov 0   ;;  %s2003_s27 = smov 0  }
   0x3 LB: > { %s2018_s28 = sadd.s32 4294967295, %s1952_s27   ;;  %s1503_s29 = sadd.s32 4294967294, %s1952_s27   ;;  %s1952_s27 = sphi %s2003_s27, %s2698_s27   ;;  %s1948_s26 = sphi %s2001_s26, %s2697_s26   ;;  %s1944_s25 = sphi %s1999_s25, %s2696_s25   ;;  %s1940_s24 = sphi %s1997_s24, %s2695_s24  }
   0x4   : > { %s2022_s30 = sadd.s32 1, %s1952_s27   ;;  %s179_s8 = sadd.s32 1, %s1948_s26 }
   0x5   : > { %s176_s9 = ssub.s32 %s1952_s27, %s2022_s30  ;;  %p189_p0 = scmp.ne.s32.totalorder %s1948_s26, %s1944_s25 }
   0x6   : > { %p177_p1 = scmp.eq.s32.totalorder %s176_s9, 0  ;;  %p190_p2 = scmp.eq.s32.totalorder %s2018_s28, 1 }
   0x7   : > { %p195_p3 = scmp.ne.s32.totalorder %s1944_s25, %s1940_s24  ;;  %p196_p4 = scmp.eq.s32.totalorder %s1503_s29, 1 }
   0x8   : > { %s2033_s10 = scalar_select %p177_p1, %s1948_s26, %s179_s8  }
   0x9   : > { %p2035_p5 = por %p190_p2, %p189_p0  ;;  %p2039_p6 = por %p196_p4, %p195_p3 }
   0xa   : > { %p1506_p7 = scmp.ge.s32.totalorder %s1952_s27, 1  ;;  %p241_p8 = scmp.lt.s32.totalorder %s1952_s27, 3 }
   0xc   : > { %p242_p9 = pnand %p1506_p7, %p241_p8 }
   0xe   : > { %245 = sbr.rel (%p242_p9) target bundleno = 550 (0x226), region = 48 }
  0x13   : > { %v1804_v0 = vld [vmem:[%s2644_s1 + $0x8] sm:$0xff]   ;;  %s1508_s15 = sshll.u32 %s2018_s28, 5  ;;  %v1805_v1 = vld [vmem:[%s2644_s1] sm:$0xff]   ;;  %vm416_vm0 = vcmask 261120   ;;  %v1824_v20 = vld [vmem:[%s2648_s5 + $0x18] sm:$0xff]   ;;  %vm1185_vm1 = vcmask 523264  }
  0x14   : > { %p274_p10 = scmp.lt.s32.totalorder %s1508_s15, 63  ;;  %1647 = vmatprep.subr.bf16.mxu0 %v1804_v0  ;;  %1759 = vmatprep.subr.bf16.mxu1 %v1804_v0  ;;  %v1810_v2 = vld [vmem:[%s2646_s3 + $0x8] sm:$0xff]   ;;  %v1819_v5 = vld [vmem:[%s2646_s3] sm:$0xff]   ;;  %v1825_v21 = vld [vmem:[%s2648_s5 + $0x10] sm:$0xff]   ;;  %s270_s29 = sand.u32 1, %s1944_s25  }
  0x15   : > { %1648 = vmatpush3.bf16.msra.mxu0 %v1804_v0  ;;  %1761 = vmatpush3.bf16.msra.mxu1 %v1804_v0  ;;  %v1826_v22 = vld [vmem:[%s2648_s5 + $0x8] sm:$0xff]   ;;  %v1827_v23 = vld [vmem:[%s2648_s5] sm:$0xff]   ;;  %s1507_s8 = sshll.u32 %s270_s29, 8  ;;  %s1954_s21 = smov [#allocation2]  }
  0x16   : > { %s2700_s15 = smov (!%p274_p10, %s1508_s15), 63  ;;  %1649 = vmatprep.subr.bf16.mxu0 %v1805_v1  ;;  %1760 = vmatprep.subr.bf16.mxu1 %v1805_v1  ;;  %v2126_v24 = vld [vmem:[%s2645_s2] ss:$0 sm:$0xff]  ;;  %s2527_s14 = scalar_lea.vmem [#allocation2], %s1507_s8 }
  0x17   : > { %s1509_s20 = sshll.u32 %s2700_s15, 2  ;;  %s1590_s15 = sshll.u32 %s2018_s28, 12 }
  0x18   : > { %s2058_s23 = scalar_lea.vmem %s2643_s0, %s1509_s20  ;;  %s1441_s16 = sshll.u32 %s2527_s14, 4  ;;  %s2596_s16 = int_to_ptr.vmem [resolvable:$true] %s1441_s16 }
  0x19   : > { %1650 = vmatpush3.bf16.msra.mxu0 %v1805_v1  ;;  %1762 = vmatpush3.bf16.msra.mxu1 %v1805_v1  ;;  %v1806_v3 = vld [vmem:[%s2058_s23] sm:$0xff]   ;;  %v1808_v6 = vld [vmem:[%s2058_s23 + $0x8] sm:$0xff]   ;;  %v1811_v8 = vld [vmem:[%s2058_s23 + $0x10] sm:$0xff]   ;;  %s2594_s19 = scalar_lea.hbm %s2650_s7, %s1590_s15  ;;  %s2603_s28 = scalar_lea.sflag [#allocation3], %s270_s29 }
  0x1a   : > { %v1807_v4 = vld [vmem:[%s2058_s23 + $0x40] sm:$0xff]   ;;  %1683 = vmatprep.subr.bf16.mxu1 %v1810_v2  ;;  %1651 = vmatprep.mubr.msk.bf16.mxu0 %vm416_vm0, %v1806_v3  ;;  %v1809_v7 = vld [vmem:[%s2058_s23 + $0x48] sm:$0xff]   ;;  %v1812_v9 = vld [vmem:[%s2058_s23 + $0x50] sm:$0xff]   ;;  %s1892_s20 = scalar_lea.vmem %s2596_s16, 4096  ;;  %s1896_s22 = sshll.u32 %s1954_s21, 4  ;;  %s1897_s22 = int_to_ptr.vmem [resolvable:$false] %s1896_s22 }
  0x1b   : > { %1667 = vmatprep.mubr.msk.bf16.mxu1 %vm416_vm0, %v1807_v4  ;;  %v1813_v10 = vld [vmem:[%s2058_s23 + $0x18] sm:$0xff]   ;;  %v1815_v12 = vld [vmem:[%s2058_s23 + $0x20] sm:$0xff]   ;;  %v1817_v14 = vld [vmem:[%s2058_s23 + $0x28] sm:$0xff]   ;;  %1719 = vmatprep.subr.bf16.mxu0 %v1824_v20  ;;  %p1893_p11 = scmp.ne.s32.totalorder %s2596_s16, %s1892_s20  ;;  %p1899_p0 = scmp.lt.s32.totalorder %s2596_s16, %s1897_s22 }
  0x1c   : > { %1652 = vmatmul.mubr.msk.bf16.vlgmr.msra.gmra.mxu0 %vm416_vm0, %v1808_v6  ;;  %1668 = vmatmul.mubr.msk.bf16.vlgmr.msra.gmra.mxu1 %vm416_vm0, %v1809_v7  ;;  %v1814_v11 = vld [vmem:[%s2058_s23 + $0x58] sm:$0xff]   ;;  %v1816_v13 = vld [vmem:[%s2058_s23 + $0x60] sm:$0xff]   ;;  %v1818_v15 = vld [vmem:[%s2058_s23 + $0x68] sm:$0xff]  }
  0x1d   : > { %1684 = vmatpush3.bf16.msra.mxu1 %v1810_v2  ;;  %1655 = vmatprep.mubr.msk.bf16.mxu0 %vm416_vm0, %v1811_v8  ;;  %v1820_v16 = vld [vmem:[%s2058_s23 + $0x30] sm:$0xff]   ;;  %v1822_v18 = vld [vmem:[%s2058_s23 + $0x38] sm:$0xff]   ;;  %p1894_p12 = pnand %p1893_p11, %p2035_p5 }
  0x1e   : > { %1671 = vmatprep.mubr.msk.bf16.mxu1 %vm416_vm0, %v1812_v9  ;;  %1685 = vmatprep.subr.bf16.mxu1 %v1819_v5  ;;  %v1821_v17 = vld [vmem:[%s2058_s23 + $0x70] sm:$0xff]   ;;  %v1823_v19 = vld [vmem:[%s2058_s23 + $0x78] sm:$0xff]   ;;  %s1898_s23 = scalar_lea.vmem %s1897_s22, 8192 }
  0x1f   : > { %1720 = vmatpush3.bf16.msra.mxu0 %v1824_v20  ;;  %p1895_p13 = pneg %p1894_p12  ;;  %p1900_p1 = scmp.lt.s32.totalorder %s1898_s23, %s1892_s20 }
  0x20   : > { %1721 = vmatprep.subr.bf16.mxu0 %v1825_v21 }
  0x21   : > { %1686 = vmatpush3.bf16.msra.mxu1 %v1819_v5  ;;  %p1901_p2 = por %p1900_p1, %p1899_p0 }
  0x23   : > { %1722 = vmatpush3.bf16.msra.mxu0 %v1825_v21  ;;  %p1902_p3 = pnand %p1901_p2, %p1895_p13 }
  0x24   : > { %1656 = vmatmul.mubr.msk.bf16.gmra.mxu0 %vm416_vm0, %v1813_v10  ;;  %1672 = vmatmul.mubr.msk.bf16.gmra.mxu1 %vm416_vm0, %v1814_v11 }
  0x25   : > { %1659 = vmatprep.mubr.msk.bf16.mxu0 %vm416_vm0, %v1815_v12  ;;  %1675 = vmatprep.mubr.msk.bf16.mxu1 %vm416_vm0, %v1816_v13 }
  0x26   : > { %1723 = vmatprep.subr.bf16.mxu0 %v1826_v22 }
  0x27   : > { %1724 = vmatpush3.bf16.msra.mxu0 %v1826_v22 }
  0x28   : > { %1725 = vmatprep.subr.bf16.mxu0 %v1827_v23 }
  0x2b   : > { %1726 = vmatpush3.bf16.msra.mxu0 %v1827_v23 }
  0x2c   : > { %1660 = vmatmul.mubr.msk.bf16.gmra.mxu0 %vm416_vm0, %v1817_v14  ;;  %1676 = vmatmul.mubr.msk.bf16.gmra.mxu1 %vm416_vm0, %v1818_v15 }
  0x2d   : > { %1663 = vmatprep.mubr.msk.bf16.mxu0 %vm416_vm0, %v1820_v16  ;;  %1679 = vmatprep.mubr.msk.bf16.mxu1 %vm416_vm0, %v1821_v17 }
  0x34   : > { %1664 = vmatmul.mubr.msk.bf16.gmra.mxu0 %vm416_vm0, %v1822_v18  ;;  %1680 = vmatmul.mubr.msk.bf16.gmra.mxu1 %vm416_vm0, %v1823_v19 }
  0x35   : > { %1687 = vmatprep.mubr.msk.bf16.mxu1 %vm416_vm0, %v1806_v3 }
  0x3c   : > { %1688 = vmatmul.mubr.msk.bf16.vlgmr.msra.gmra.mxu1 %vm416_vm0, %v1808_v6 }
  0x3d   : > { %1691 = vmatprep.mubr.msk.bf16.mxu1 %vm416_vm0, %v1811_v8 }
  0x44   : > { %1692 = vmatmul.mubr.msk.bf16.gmra.mxu1 %vm416_vm0, %v1813_v10 }
  0x45   : > { %1695 = vmatprep.mubr.msk.bf16.mxu1 %vm416_vm0, %v1815_v12 }
  0x4c   : > { %1696 = vmatmul.mubr.msk.bf16.gmra.mxu1 %vm416_vm0, %v1817_v14 }
  0x4d   : > { %1699 = vmatprep.mubr.msk.bf16.mxu1 %vm416_vm0, %v1820_v16 }
  0x54   : > { %1700 = vmatmul.mubr.msk.bf16.gmra.mxu1 %vm416_vm0, %v1822_v18 }
  0x55   : > { %1703 = vmatprep.mubr.msk.bf16.mxu1 %vm416_vm0, %v1807_v4 }
  0x5c   : > { %1704 = vmatmul.mubr.msk.bf16.gmra.mxu1 %vm416_vm0, %v1809_v7 }
  0x5d   : > { %1707 = vmatprep.mubr.msk.bf16.mxu1 %vm416_vm0, %v1812_v9 }
  0x64   : > { %1708 = vmatmul.mubr.msk.bf16.gmra.mxu1 %vm416_vm0, %v1814_v11 }
  0x65   : > { %1711 = vmatprep.mubr.msk.bf16.mxu1 %vm416_vm0, %v1816_v13 }
  0x6c   : > { %1712 = vmatmul.mubr.msk.bf16.gmra.mxu1 %vm416_vm0, %v1818_v15 }
  0x6d   : > { %1715 = vmatprep.mubr.msk.bf16.mxu1 %vm416_vm0, %v1821_v17 }
  0x74   : > { %1716 = vmatmul.mubr.msk.bf16.gmra.mxu1 %vm416_vm0, %v1823_v19 }
  0xdc   : > { %v1653_v25 = vpop.f32.mrf.mxu0  ;;  %v1669_v27 = vpop.f32.mrf.mxu1 }
  0xdd   : > { %v508_v26 = vadd.f32 %v1653_v25, %v2126_v24  ;;  %v2132_v38 = vadd.f32 %v1669_v27, %v2126_v24 }
  0xde   : > { %v499_v28 = vpop.f32.mrf.mxu0  ;;  %v563_v31 = vpop.f32.mrf.mxu1 }
  0xdf   : > { %v844_v29 = vmul.f32 0.044715, %v508_v26  ;;  %v500_v30 = vadd.f32 %v2126_v24, %v499_v28  ;;  %v2138_v47 = vadd.f32 %v2126_v24, %v563_v31  ;;  %v860_v50 = vmul.f32 0.044715, %v2132_v38 }
  0xe0   : > { %v1654_v32 = vpop.f32.mrf.mxu0  ;;  %v1670_v36 = vpop.f32.mrf.mxu1  ;;  %v2145_v57 = vmul.f32 0.5, %v508_v26  ;;  %v2157_v63 = vmul.f32 0.5, %v2132_v38 }
  0xe1   : > { %v876_v33 = vmul.f32 %v844_v29, %v508_v26  ;;  %v842_v34 = vmul.f32 0.044715, %v500_v30  ;;  %v511_v35 = vadd.f32 %v1654_v32, %v2126_v24  ;;  %v2142_v54 = vadd.f32 %v1670_v36, %v2126_v24 }
  0xe2   : > { %v502_v37 = vpop.f32.mrf.mxu0  ;;  %v566_v41 = vpop.f32.mrf.mxu1  ;;  %2665 = vst [vmem:[#allocation5_spill] sm:$0xff] %v2157_v63  ;;  %v858_v0 = vmul.f32 0.044715, %v2138_v47  ;;  %v2166_v4 = vmul.f32 0.5, %v500_v30  ;;  %v2169_v5 = vmul.f32 %v860_v50, %v2132_v38  ;;  %v2177_v13 = vmul.f32 0.5, %v2138_v47 }
  0xe3   : > { %v874_v39 = vmul.f32 %v842_v34, %v500_v30  ;;  %v845_v40 = vmul.f32 0.044715, %v511_v35  ;;  %v908_v42 = vmul.f32 %v876_v33, %v508_v26  ;;  %v2135_v43 = vadd.f32 %v2126_v24, %v502_v37 }
  0xe4   : > { %v1657_v44 = vpop.f32.mrf.mxu0  ;;  %v1673_v45 = vpop.f32.mrf.mxu1  ;;  %v2148_v59 = vadd.f32 %v2126_v24, %v566_v41  ;;  %v861_v9 = vmul.f32 0.044715, %v2142_v54  ;;  %2666 = vst [vmem:[#allocation6_spill] sm:$0xff] %v2177_v13  ;;  %v2183_v19 = vmul.f32 %v858_v0, %v2138_v47  ;;  %v2187_v23 = vmul.f32 0.5, %v511_v35 }
  0xe5   : > { %v940_v46 = vadd.f32 %v908_v42, %v508_v26  ;;  %v906_v49 = vmul.f32 %v874_v39, %v500_v30  ;;  %v877_v51 = vmul.f32 %v845_v40, %v511_v35  ;;  %v843_v55 = vmul.f32 0.044715, %v2135_v43 }
  0xe6   : > { %v515_v48 = vpop.f32.mrf.mxu0  ;;  %v579_v52 = vpop.f32.mrf.mxu1  ;;  %v2151_v60 = vadd.f32 %v1657_v44, %v2126_v24  ;;  %v2154_v61 = vadd.f32 %v1673_v45, %v2126_v24  ;;  %v859_v14 = vmul.f32 0.044715, %v2148_v59 }
  0xe7   : > { %v972_v53 = vmul.f32 0.7978846, %v940_v46  ;;  %v938_v58 = vadd.f32 %v906_v49, %v500_v30  ;;  %v2161_v1 = vadd.f32 %v2126_v24, %v515_v48  ;;  %v2164_v2 = vadd.f32 %v2126_v24, %v579_v52 }
  0xe8   : > { %v1658_v56 = vpop.f32.mrf.mxu0  ;;  %v1674_v62 = vpop.f32.mrf.mxu1  ;;  %v909_v8 = vmul.f32 %v877_v51, %v511_v35  ;;  %v875_v10 = vmul.f32 %v843_v55, %v2135_v43  ;;  %v848_v15 = vmul.f32 0.044715, %v2151_v60  ;;  %v864_v16 = vmul.f32 0.044715, %v2154_v61 }
  0xe9   : > { %v2172_v6 = vadd.f32 %v1658_v56, %v2126_v24  ;;  %1828 = vtanh.f32 %v972_v53  ;;  %v970_v12 = vmul.f32 0.7978846, %v938_v58  ;;  %v846_v20 = vmul.f32 0.044715, %v2161_v1 }
  0xea   : > { %v518_v3 = vpop.f32.mrf.mxu0  ;;  %v582_v7 = vpop.f32.mrf.mxu1  ;;  %v941_v18 = vadd.f32 %v909_v8, %v511_v35  ;;  %v862_v21 = vmul.f32 0.044715, %v2164_v2  ;;  %v2191_v26 = vadd.f32 %v1674_v62, %v2126_v24  ;;  %v2197_v30 = vmul.f32 %v861_v9, %v2142_v54 }
  0xeb   : > { %v849_v25 = vmul.f32 0.044715, %v2172_v6  ;;  %v2194_v27 = vadd.f32 %v2126_v24, %v518_v3  ;;  %v2200_v31 = vadd.f32 %v2126_v24, %v582_v7  ;;  %1830 = vtanh.f32 %v970_v12 }
  0xec   : > { %v1661_v11 = vpop.f32.mrf.mxu0  ;;  %v1677_v17 = vpop.f32.mrf.mxu1  ;;  %v973_v29 = vmul.f32 0.7978846, %v941_v18  ;;  %v907_v33 = vmul.f32 %v875_v10, %v2135_v43  ;;  %v2204_v34 = vmul.f32 %v859_v14, %v2148_v59  ;;  %v880_v35 = vmul.f32 %v848_v15, %v2151_v60 }
  0xed   : > { %2667 = vst [vmem:[#allocation7_spill] sm:$0xff] %v2200_v31  ;;  %v2208_v36 = vmul.f32 %v864_v16, %v2154_v61  ;;  %v2211_v39 = vmul.f32 %v846_v20, %v2161_v1  ;;  %v2214_v40 = vmul.f32 %v862_v21, %v2164_v2  ;;  %v2217_v41 = vadd.f32 %v1661_v11, %v2126_v24 }
  0xee   : > { %v531_v22 = vpop.f32.mrf.mxu0  ;;  %v595_v28 = vpop.f32.mrf.mxu1  ;;  %1832 = vtanh.f32 %v973_v29  ;;  %v939_v44 = vadd.f32 %v907_v33, %v2135_v43  ;;  %v2221_v45 = vmul.f32 %v849_v25, %v2172_v6  ;;  %v865_v46 = vmul.f32 0.044715, %v2191_v26 }
  0xef   : > { %v847_v48 = vmul.f32 0.044715, %v2194_v27  ;;  %v2226_v49 = vadd.f32 %v1677_v17, %v2126_v24  ;;  %v863_v51 = vmul.f32 0.044715, %v2200_v31  ;;  %v2230_v52 = vadd.f32 %v2126_v24, %v531_v22 }
  0xf0   : > { %v1662_v32 = vpop.f32.mrf.mxu0  ;;  %v1678_v37 = vpop.f32.mrf.mxu1  ;;  %v2233_v53 = vadd.f32 %v2126_v24, %v595_v28  ;;  %v971_v56 = vmul.f32 0.7978846, %v939_v44  ;;  %v912_v7 = vmul.f32 %v880_v35, %v2151_v60  ;;  %v852_v8 = vmul.f32 0.044715, %v2217_v41 }
  0xf1   : > { %2668 = vst [vmem:[#allocation8_spill] sm:$0xff] %v2226_v49  ;;  %v2236_v58 = vadd.f32 %v1662_v32, %v2126_v24  ;;  %v2239_v62 = vadd.f32 %v1678_v37, %v2126_v24  ;;  %v2253_v12 = vmul.f32 %v865_v46, %v2191_v26  ;;  %v868_v14 = vmul.f32 0.044715, %v2226_v49 }
  0xf2   : > { %v534_v42 = vpop.f32.mrf.mxu0  ;;  %v598_v50 = vpop.f32.mrf.mxu1  ;;  %2669 = vst [vmem:[#allocation9_spill] sm:$0xff] %v2233_v53  ;;  %1834 = vtanh.f32 %v971_v56  ;;  %v2260_v17 = vmul.f32 0.5, %v2135_v43  ;;  %v879_v20 = vmul.f32 %v847_v48, %v2194_v27  ;;  %v850_v21 = vmul.f32 0.044715, %v2230_v52 }
  0xf3   : > { %2670 = vst [vmem:[#allocation10_spill] sm:$0xff] %v2239_v62  ;;  %v2242_v0 = vadd.f32 %v2126_v24, %v534_v42  ;;  %v2247_v9 = vadd.f32 %v2126_v24, %v598_v50  ;;  %2672 = vst [vmem:[#allocation12_spill] sm:$0xff] %v2253_v12  ;;  %v866_v22 = vmul.f32 0.044715, %v2233_v53  ;;  %v944_v25 = vadd.f32 %v912_v7, %v2151_v60 }
  0xf4   : > { %v1665_v55 = vpop.f32.mrf.mxu0  ;;  %v1681_v3 = vpop.f32.mrf.mxu1  ;;  %v2267_v28 = vmul.f32 %v863_v51, %v2200_v31  ;;  %v853_v29 = vmul.f32 0.044715, %v2236_v58  ;;  %v869_v32 = vmul.f32 0.044715, %v2239_v62  ;;  %v884_v35 = vmul.f32 %v852_v8, %v2217_v41 }
  0xf5   : > { %2671 = vst [vmem:[#allocation11_spill] sm:$0xff] %v2247_v9  ;;  %v2250_v10 = vadd.f32 %v1665_v55, %v2126_v24  ;;  %v2257_v15 = vadd.f32 %v1681_v3, %v2126_v24  ;;  %v851_v33 = vmul.f32 0.044715, %v2242_v0  ;;  %v867_v37 = vmul.f32 0.044715, %v2247_v9 }
  0xf6   : > { %v547_v11 = vpop.f32.mrf.mxu0  ;;  %v611_v16 = vpop.f32.mrf.mxu1  ;;  %2674 = vst [vmem:[#allocation14_spill] sm:$0xff] %v2267_v28  ;;  %v2279_v48 = vmul.f32 %v868_v14, %v2226_v49  ;;  %v882_v3 = vmul.f32 %v850_v21, %v2230_v52  ;;  %v2289_v7 = vmul.f32 %v866_v22, %v2233_v53  ;;  %v2292_v8 = vmul.f32 0.5, %v2151_v60 }
  0xf7   : > { %2673 = vst [vmem:[#allocation13_spill] sm:$0xff] %v2257_v15  ;;  %v1829_v18 = vpop.eup %1828  ;;  %v856_v42 = vmul.f32 0.044715, %v2250_v10  ;;  %v2276_v44 = vadd.f32 %v2126_v24, %v547_v11  ;;  %v872_v50 = vmul.f32 0.044715, %v2257_v15  ;;  %v2283_v51 = vadd.f32 %v2126_v24, %v611_v16 }
  0xf8   : > { %v1682_v43 = vpop.f32.mrf.mxu1  ;;  %v1666_v46 = vpop.f32.mrf.mxu0  ;;  %2675 = vst [vmem:[#allocation15_spill] sm:$0xff] %v2279_v48  ;;  %v1036_v56 = vadd.f32 1.0, %v1829_v18  ;;  %2676 = vst [vmem:[#allocation16_spill] sm:$0xff] %v2289_v7  ;;  %v976_v11 = vmul.f32 0.7978846, %v944_v25  ;;  %v885_v14 = vmul.f32 %v853_v29, %v2236_v58  ;;  %v2296_v63 = vmul.f32 %v869_v32, %v2239_v62 }
  0xf9   : > { %v1831_v13 = vpop.eup %1830  ;;  %v883_v16 = vmul.f32 %v851_v33, %v2242_v0  ;;  %v2300_v48 = vadd.f32 %v1666_v46, %v2126_v24  ;;  %v2303_v22 = vmul.f32 %v867_v37, %v2247_v9  ;;  %v888_v60 = vmul.f32 %v856_v42, %v2250_v10  ;;  %v2316_v46 = vld [vmem:[%s2647_s4] ss:$0 sm:$0xff] }
  0xfa   : > { %v2285_v55 = vpop.f32.mrf.mxu1  ;;  %2677 = vst [vmem:[#allocation17_spill] sm:$0xff] %v2296_v63  ;;  %v854_v25 = vmul.f32 0.044715, %v2276_v44  ;;  %v910_v29 = vmul.f32 %v2211_v39, %v2161_v1  ;;  %v2310_v32 = vmul.f32 %v872_v50, %v2257_v15  ;;  %v870_v33 = vmul.f32 0.044715, %v2283_v51  ;;  %v550_v63 = vpop.f32.mrf.mxu0 }
  0xfb   : > { %v1833_v21 = vpop.eup %1832  ;;  %2678 = vst [vmem:[#allocation18_spill] sm:$0xff] %v2303_v22  ;;  %v1068_v37 = vmul.f32 %v1036_v56, %v2145_v57  ;;  %v913_v42 = vmul.f32 %v2221_v45, %v2172_v6  ;;  %v2322_v9 = vadd.f32 %v1682_v43, %v2126_v24  ;;  %1836 = vtanh.f32 %v976_v11 }
  0xfc   : > { %v1689_v18 = vpop.f32.mrf.mxu1  ;;  %2679 = vst [vmem:[#allocation19_spill] sm:$0xff] %v2310_v32  ;;  %v1037_v39 = vadd.f32 1.0, %v1833_v21  ;;  %v942_v50 = vadd.f32 %v910_v29, %v2161_v1  ;;  %v857_v32 = vmul.f32 0.044715, %v2300_v48  ;;  %v1034_v15 = vadd.f32 1.0, %v1831_v13 }
  0xfd   : > { %v945_v7 = vadd.f32 %v913_v42, %v2172_v6  ;;  %v911_v57 = vmul.f32 %v879_v20, %v2194_v27  ;;  %v2329_v56 = vadd.f32 %v2126_v24, %v550_v63  ;;  %v692_v45 = vadd.f32 %v1689_v18, %v2316_v46 }
  0xfe   : > { %v683_v22 = vpop.f32.mrf.mxu1  ;;  %v974_v21 = vmul.f32 0.7978846, %v942_v50  ;;  %v916_v42 = vmul.f32 %v884_v35, %v2217_v41  ;;  %v1069_v28 = vmul.f32 %v1037_v39, %v2187_v23  ;;  %v914_v50 = vmul.f32 %v882_v3, %v2230_v52 }
  0xff   : > { %v1835_v11 = vpop.eup %1834  ;;  %v684_v29 = vadd.f32 %v2316_v46, %v683_v22  ;;  %v977_v49 = vmul.f32 0.7978846, %v945_v7  ;;  %v943_v13 = vadd.f32 %v911_v57, %v2194_v27  ;;  %v855_v22 = vmul.f32 0.044715, %v2329_v56 }
 0x100   : > { %v1690_v62 = vpop.f32.mrf.mxu1  ;;  %v1035_v63 = vadd.f32 1.0, %v1835_v11  ;;  %1838 = vtanh.f32 %v974_v21  ;;  %v1066_v7 = vmul.f32 %v1034_v15, %v2166_v4  ;;  %v917_v39 = vmul.f32 %v885_v14, %v2236_v58 }
 0x101   : > { %v695_v43 = vadd.f32 %v1690_v62, %v2316_v46  ;;  %1840 = vtanh.f32 %v977_v49  ;;  %v975_v18 = vmul.f32 0.7978846, %v943_v13  ;;  %v948_v62 = vadd.f32 %v916_v42, %v2217_v41 }
 0x102   : > { %v686_v53 = vpop.f32.mrf.mxu1  ;;  %v1067_v35 = vmul.f32 %v1035_v63, %v2260_v17  ;;  %v886_v49 = vmul.f32 %v854_v25, %v2276_v44  ;;  %v1098_v21 = vmul.f32 %v1066_v7, %v684_v29  ;;  %v915_v3 = vmul.f32 %v883_v16, %v2242_v0 }
 0x103   : > { %v687_v20 = vadd.f32 %v2316_v46, %v686_v53  ;;  %v1101_v57 = vmul.f32 %v1069_v28, %v695_v43  ;;  %1842 = vtanh.f32 %v975_v18  ;;  %v980_v23 = vmul.f32 0.7978846, %v948_v62 }
 0x104   : > { %v1693_v31 = vpop.f32.mrf.mxu1  ;;  %v946_v53 = vadd.f32 %v914_v50, %v2230_v52  ;;  %v889_v13 = vmul.f32 %v857_v32, %v2300_v48  ;;  %v1100_v42 = vmul.f32 %v1068_v37, %v692_v45  ;;  %v949_v17 = vadd.f32 %v917_v39, %v2236_v58 }
 0x105   : > { %v1099_v11 = vmul.f32 %v1067_v35, %v687_v20  ;;  %1844 = vtanh.f32 %v980_v23  ;;  %v947_v43 = vadd.f32 %v915_v3, %v2242_v0  ;;  %v920_v63 = vmul.f32 %v888_v60, %v2250_v10 }
 0x106   : > { %v699_v12 = vpop.f32.mrf.mxu1  ;;  %v978_v15 = vmul.f32 0.7978846, %v946_v53  ;;  %v887_v14 = vmul.f32 %v855_v22, %v2329_v56  ;;  %v1131_v25 = vpack.c.bf16 %v1101_v57, %v1100_v42  ;;  %v981_v20 = vmul.f32 0.7978846, %v949_v17 }
 0x107   : > { %v1130_v28 = vpack.c.bf16 %v1099_v11, %v1098_v21  ;;  %v2353_v16 = vmul.f32 %v870_v33, %v2283_v51  ;;  %v979_v32 = vmul.f32 0.7978846, %v947_v43  ;;  %v952_v37 = vadd.f32 %v920_v63, %v2250_v10 }
 0x108   : > { %v1694_v4 = vpop.f32.mrf.mxu1  ;;  %1846 = vtanh.f32 %v978_v15  ;;  %v918_v45 = vmul.f32 %v886_v49, %v2276_v44  ;;  %v1837_v18 = vpop.eup %1836  ;;  %v2359_v62 = vmul.f32 0.044715, %v2322_v9  ;;  %v2363_v60 = vadd.f32 %v2126_v24, %v2285_v55 }
 0x109   : > { %1727 = vmatprep.mubr.msk.bf16.mxu0 %vm1185_vm1, %v1130_v28  ;;  %1848 = vtanh.f32 %v981_v20  ;;  %v921_v33 = vmul.f32 %v889_v13, %v2300_v48  ;;  %v814_v22 = vmul.f32 0.5, %v2161_v1  ;;  %v984_v7 = vmul.f32 0.7978846, %v952_v37 }
 0x10a   : > { %v702_v29 = vpop.f32.mrf.mxu1  ;;  %1728 = vmatmul.mubr.msk.bf16.vlgmr.msra.gmra.mxu0 %vm1185_vm1, %v1131_v25  ;;  %1850 = vtanh.f32 %v979_v32  ;;  %v950_v57 = vadd.f32 %v918_v45, %v2276_v44  ;;  %v817_v35 = vmul.f32 0.5, %v2172_v6  ;;  %v815_v23 = vmul.f32 0.5, %v2194_v27 }
 0x10b   : > { %v953_v24 = vadd.f32 %v921_v33, %v2300_v48  ;;  %v919_v55 = vmul.f32 %v887_v14, %v2329_v56  ;;  %v708_v39 = vadd.f32 %v1693_v31, %v2316_v46  ;;  %v1040_v49 = vadd.f32 1.0, %v1837_v18 }
 0x10c   : > { %v2366_v50 = vpop.f32.mrf.mxu1  ;;  %v982_v21 = vmul.f32 0.7978846, %v950_v57  ;;  %v924_v1 = vmul.f32 %v2169_v5, %v2132_v38  ;;  %1852 = vtanh.f32 %v984_v7  ;;  %v922_v27 = vmul.f32 %v2183_v19, %v2138_v47 }
 0x10d   : > { %v1839_v11 = vpop.eup %1838  ;;  %v985_v13 = vmul.f32 0.7978846, %v953_v24  ;;  %v951_v6 = vadd.f32 %v919_v55, %v2329_v56  ;;  %v700_v15 = vadd.f32 %v2316_v46, %v699_v12  ;;  %v711_v25 = vadd.f32 %v1694_v4, %v2316_v46 }
 0x10e   : > { %v715_v53 = vpop.f32.mrf.mxu1  ;;  %v1841_v42 = vpop.eup %1840  ;;  %v1038_v17 = vadd.f32 1.0, %v1839_v11  ;;  %1854 = vtanh.f32 %v982_v21  ;;  %v956_v31 = vadd.f32 %v924_v1, %v2132_v38  ;;  %v954_v63 = vadd.f32 %v922_v27, %v2138_v47 }
 0x10f   : > { %v1041_v28 = vadd.f32 1.0, %v1841_v42  ;;  %1856 = vtanh.f32 %v985_v13  ;;  %v983_v5 = vmul.f32 0.7978846, %v951_v6  ;;  %v703_v20 = vadd.f32 %v2316_v46, %v702_v29 }
 0x110   : > { %v1698_v3 = vpop.f32.mrf.mxu1  ;;  %v1843_v14 = vpop.eup %1842  ;;  %v988_v32 = vmul.f32 0.7978846, %v956_v31  ;;  %v925_v19 = vmul.f32 %v2197_v30, %v2142_v54  ;;  %v1072_v12 = vmul.f32 %v1040_v49, %v2292_v8  ;;  %v986_v38 = vmul.f32 0.7978846, %v954_v63 }
 0x111   : > { %v1039_v37 = vadd.f32 1.0, %v1843_v14  ;;  %1858 = vtanh.f32 %v983_v5  ;;  %v1073_v18 = vmul.f32 %v1041_v28, %v817_v35  ;;  %v818_v33 = vmul.f32 0.5, %v2230_v52 }
 0x112   : > { %v718_v43 = vpop.f32.mrf.mxu1  ;;  %v821_v47 = vmul.f32 0.5, %v2236_v58  ;;  %v957_v4 = vadd.f32 %v925_v19, %v2142_v54  ;;  %v1845_v7 = vpop.eup %1844  ;;  %v1104_v29 = vmul.f32 %v1072_v12, %v708_v39  ;;  %v1070_v57 = vmul.f32 %v1038_v17, %v814_v22 }
 0x113   : > { %v1071_v24 = vmul.f32 %v1039_v37, %v815_v23  ;;  %v819_v30 = vmul.f32 0.5, %v2242_v0  ;;  %v1105_v49 = vmul.f32 %v1073_v18, %v711_v25  ;;  %1860 = vtanh.f32 %v988_v32 }
 0x114   : > { %v2389_v45 = vpop.f32.mrf.mxu1  ;;  %v989_v21 = vmul.f32 0.7978846, %v957_v4  ;;  %v923_v35 = vmul.f32 %v2204_v34, %v2148_v59  ;;  %v1102_v1 = vmul.f32 %v1070_v57, %v700_v15  ;;  %v716_v58 = vadd.f32 %v2316_v46, %v715_v53 }
 0x115   : > { %v1847_v8 = vpop.eup %1846  ;;  %v1103_v52 = vmul.f32 %v1071_v24, %v703_v20  ;;  %1862 = vtanh.f32 %v986_v38  ;;  %v727_v22 = vadd.f32 %v1698_v3, %v2316_v46  ;;  %v1044_v27 = vadd.f32 1.0, %v1845_v7 }
 0x116   : > { %v731_v55 = vpop.f32.mrf.mxu1  ;;  %v1849_v13 = vpop.eup %1848  ;;  %v1042_v39 = vadd.f32 1.0, %v1847_v8  ;;  %1864 = vtanh.f32 %v989_v21  ;;  %v955_v0 = vadd.f32 %v923_v35, %v2148_v59  ;;  %v719_v17 = vadd.f32 %v2316_v46, %v718_v43 }
 0x117   : > { %v1851_v23 = vpop.eup %1850  ;;  %v1132_v6 = vpack.c.bf16 %v1103_v52, %v1102_v1  ;;  %v1045_v42 = vadd.f32 1.0, %v1849_v13  ;;  %v1133_v15 = vpack.c.bf16 %v1105_v49, %v1104_v29  ;;  %v928_v53 = vmul.f32 %v2208_v36, %v2154_v61  ;;  %v2680_v13 = vld [vmem:[#allocation12_spill] sm:$0xff] }
 0x118   : > { %v1702_v11 = vpop.f32.mrf.mxu1  ;;  %v1043_v31 = vadd.f32 1.0, %v1851_v23  ;;  %v987_v28 = vmul.f32 0.7978846, %v955_v0  ;;  %v2404_v5 = vmul.f32 0.044715, %v2363_v60  ;;  %v724_v3 = vadd.f32 %v2366_v50, %v2316_v46 }
 0x119   : > { %v820_v63 = vmul.f32 0.5, %v2217_v41  ;;  %1731 = vmatprep.mubr.msk.bf16.mxu0 %vm1185_vm1, %v1132_v6  ;;  %v926_v43 = vmul.f32 %v2214_v40, %v2164_v2  ;;  %v1853_v25 = vpop.eup %1852  ;;  %v1074_v20 = vmul.f32 %v1042_v39, %v818_v33  ;;  %v1077_v32 = vmul.f32 %v1045_v42, %v821_v47 }
 0x11a   : > { %v734_v34 = vpop.f32.mrf.mxu1  ;;  %v1075_v19 = vmul.f32 %v1043_v31, %v819_v30  ;;  %1732 = vmatmul.mubr.msk.bf16.gmra.mxu0 %vm1185_vm1, %v1133_v15  ;;  %1866 = vtanh.f32 %v987_v28  ;;  %v824_v37 = vmul.f32 0.5, %v2250_v10  ;;  %v822_v50 = vmul.f32 0.5, %v2276_v44  ;;  %v2681_v28 = vld [vmem:[#allocation7_spill] sm:$0xff] }
 0x11b   : > { %v1855_v36 = vpop.eup %1854  ;;  %v1076_v12 = vmul.f32 %v1044_v27, %v820_v63  ;;  %v960_v38 = vadd.f32 %v928_v53, %v2154_v61  ;;  %v1106_v4 = vmul.f32 %v1074_v20, %v716_v58  ;;  %v1109_v7 = vmul.f32 %v1077_v32, %v727_v22 }
 0x11c   : > { %v1705_v14 = vpop.f32.mrf.mxu1  ;;  %v1857_v18 = vpop.eup %1856  ;;  %v1107_v40 = vmul.f32 %v1075_v19, %v719_v17  ;;  %v958_v33 = vadd.f32 %v926_v43, %v2164_v2  ;;  %v732_v47 = vadd.f32 %v2316_v46, %v731_v55  ;;  %v1046_v29 = vadd.f32 1.0, %v1855_v36 }
 0x11d   : > { %v825_v57 = vmul.f32 0.5, %v2300_v48  ;;  %v823_v24 = vmul.f32 0.5, %v2329_v56  ;;  %v1108_v8 = vmul.f32 %v1076_v12, %v724_v3  ;;  %v1048_v49 = vadd.f32 1.0, %v1853_v25 }
 0x11e   : > { %v747_v41 = vpop.f32.mrf.mxu1  ;;  %v1859_v10 = vpop.eup %1858  ;;  %v1134_v44 = vpack.c.bf16 %v1107_v40, %v1106_v4  ;;  %v1049_v21 = vadd.f32 1.0, %v1857_v18  ;;  %v735_v35 = vadd.f32 %v2316_v46, %v734_v34  ;;  %v992_v58 = vmul.f32 0.7978846, %v960_v38  ;;  %v2683_v4 = vld [vmem:[#allocation8_spill] sm:$0xff] }
 0x11f   : > { %v1047_v1 = vadd.f32 1.0, %v1859_v10  ;;  %v929_v39 = vmul.f32 %v2680_v13, %v2191_v26  ;;  %v1135_v55 = vpack.c.bf16 %v1109_v7, %v1108_v8  ;;  %v743_v22 = vadd.f32 %v1702_v11, %v2316_v46  ;;  %v2684_v7 = vld [vmem:[#allocation15_spill] sm:$0xff]  ;;  %v2687_v8 = vld [vmem:[#allocation10_spill] sm:$0xff] }
 0x120   : > { %v1706_v30 = vpop.f32.mrf.mxu1  ;;  %1735 = vmatprep.mubr.msk.bf16.mxu0 %vm1185_vm1, %v1134_v44  ;;  %v829_v48 = vmul.f32 0.5, %v2142_v54  ;;  %v990_v56 = vmul.f32 0.7978846, %v958_v33  ;;  %v1861_v0 = vpop.eup %1860  ;;  %v740_v23 = vadd.f32 %v2389_v45, %v2316_v46  ;;  %v1078_v6 = vmul.f32 %v1046_v29, %v822_v50  ;;  %v2682_v54 = vld [vmem:[#allocation14_spill] sm:$0xff]  ;;  %v2688_v44 = vld [vmem:[#allocation17_spill] sm:$0xff] }
 0x121   : > { %v1079_v27 = vmul.f32 %v1047_v1, %v823_v24  ;;  %v961_v17 = vadd.f32 %v929_v39, %v2191_v26  ;;  %v1080_v15 = vmul.f32 %v1048_v49, %v824_v37  ;;  %v1081_v31 = vmul.f32 %v1049_v21, %v825_v57  ;;  %v2685_v57 = vld [vmem:[#allocation9_spill] sm:$0xff]  ;;  %v2686_v24 = vld [vmem:[#allocation16_spill] sm:$0xff] }
 0x122   : > { %v750_v52 = vpop.f32.mrf.mxu1  ;;  %v1863_v34 = vpop.eup %1862  ;;  %1736 = vmatmul.mubr.msk.bf16.gmra.mxu0 %vm1185_vm1, %v1135_v55  ;;  %v827_v11 = vmul.f32 0.5, %v2148_v59  ;;  %v927_v53 = vmul.f32 %v2682_v54, %v2681_v28  ;;  %v1110_v63 = vmul.f32 %v1078_v6, %v732_v47  ;;  %1868 = vtanh.f32 %v992_v58  ;;  %v2689_v58 = vld [vmem:[#allocation5_spill] sm:$0xff]  ;;  %v2691_v6 = vld [vmem:[#allocation11_spill] sm:$0xff] }
 0x123   : > { %v1865_v3 = vpop.eup %1864  ;;  %v1111_v43 = vmul.f32 %v1079_v27, %v735_v35  ;;  %v993_v25 = vmul.f32 0.7978846, %v961_v17  ;;  %v1113_v20 = vmul.f32 %v1081_v31, %v743_v22  ;;  %v756_v32 = vadd.f32 %v1705_v14, %v2316_v46  ;;  %v2690_v22 = vld [vmem:[#allocation6_spill] sm:$0xff]  ;;  %v2693_v31 = vld [vmem:[#allocation13_spill] sm:$0xff]  ;;  %v2694_v54 = vld [vmem:[#allocation19_spill] sm:$0xff] }
 0x124   : > { %v2428_v42 = vpop.f32.mrf.mxu1  ;;  %1870 = vtanh.f32 %v990_v56  ;;  %v959_v19 = vadd.f32 %v927_v53, %v2681_v28  ;;  %v1112_v36 = vmul.f32 %v1080_v15, %v740_v23  ;;  %v1052_v37 = vadd.f32 1.0, %v1861_v0 }
 0x125   : > { %v1136_v12 = vpack.c.bf16 %v1111_v43, %v1110_v63  ;;  %1872 = vtanh.f32 %v993_v25  ;;  %v1050_v50 = vadd.f32 1.0, %v1863_v34  ;;  %v1053_v38 = vadd.f32 1.0, %v1865_v3 }
 0x126   : > { %v2435_v45 = vpop.f32.mrf.mxu1  ;;  %v991_v18 = vmul.f32 0.7978846, %v959_v19  ;;  %v932_v40 = vmul.f32 %v2684_v7, %v2683_v4  ;;  %v748_v47 = vadd.f32 %v2316_v46, %v747_v41  ;;  %v759_v14 = vadd.f32 %v1706_v30, %v2316_v46 }
 0x127   : > { %v1867_v33 = vpop.eup %1866  ;;  %1739 = vmatprep.mubr.msk.bf16.mxu0 %vm1185_vm1, %v1136_v12  ;;  %v930_v10 = vmul.f32 %v2686_v24, %v2685_v57  ;;  %v933_v49 = vmul.f32 %v2688_v44, %v2687_v8  ;;  %v1137_v21 = vpack.c.bf16 %v1113_v20, %v1112_v36  ;;  %v751_v35 = vadd.f32 %v2316_v46, %v750_v52  ;;  %v2692_v52 = vld [vmem:[#allocation18_spill] sm:$0xff] }
 0x128   : > { %v2439_v59 = vpop.f32.mrf.mxu1  ;;  %v1051_v1 = vadd.f32 1.0, %v1867_v33  ;;  %1874 = vtanh.f32 %v991_v18  ;;  %v1084_v13 = vmul.f32 %v1052_v37, %v2689_v58  ;;  %v964_v30 = vadd.f32 %v932_v40, %v2683_v4 }
 0x129   : > { %v962_v39 = vadd.f32 %v930_v10, %v2685_v57  ;;  %v965_v55 = vadd.f32 %v933_v49, %v2687_v8  ;;  %v1082_v56 = vmul.f32 %v1050_v50, %v2690_v22  ;;  %v1085_v0 = vmul.f32 %v1053_v38, %v829_v48 }
 0x12a   : > { %v2446_v29 = vpop.f32.mrf.mxu1  ;;  %v1083_v23 = vmul.f32 %v1051_v1, %v827_v11  ;;  %1740 = vmatmul.mubr.msk.bf16.gmra.mxu0 %vm1185_vm1, %v1137_v21  ;;  %v931_v27 = vmul.f32 %v2692_v52, %v2691_v6  ;;  %v996_v17 = vmul.f32 0.7978846, %v964_v30  ;;  %v936_v53 = vmul.f32 %v2694_v54, %v2693_v31 }
 0x12b   : > { %v994_v34 = vmul.f32 0.7978846, %v962_v39  ;;  %v997_v15 = vmul.f32 0.7978846, %v965_v55  ;;  %v1114_v3 = vmul.f32 %v1082_v56, %v748_v47  ;;  %v1117_v63 = vmul.f32 %v1085_v0, %v759_v14 }
 0x12c   : > { %v2454_v41 = vpop.f32.mrf.mxu1  ;;  %v1115_v43 = vmul.f32 %v1083_v23, %v751_v35  ;;  %v963_v20 = vadd.f32 %v931_v27, %v2691_v6  ;;  %v905_v48 = vmul.f32 %v2359_v62, %v2322_v9  ;;  %1876 = vtanh.f32 %v996_v17 }
 0x12d   : > { %v968_v11 = vadd.f32 %v936_v53, %v2693_v31  ;;  %v1116_v19 = vmul.f32 %v1084_v13, %v756_v32  ;;  %1878 = vtanh.f32 %v994_v34  ;;  %v903_v12 = vmul.f32 %v2404_v5, %v2363_v60 }
 0x12e   : > { %v2465_v25 = vpop.f32.mrf.mxu1  ;;  %v1138_v36 = vpack.c.bf16 %v1115_v43, %v1114_v3  ;;  %1880 = vtanh.f32 %v997_v15  ;;  %v995_v37 = vmul.f32 0.7978846, %v963_v20  ;;  %v934_v62 = vmul.f32 %v2353_v16, %v2283_v51 }
 0x12f   : > { %v1000_v50 = vmul.f32 0.7978846, %v968_v11  ;;  %v1869_v38 = vpop.eup %1868  ;;  %v1139_v18 = vpack.c.bf16 %v1117_v63, %v1116_v19  ;;  %v937_v32 = vmul.f32 %v905_v48, %v2322_v9  ;;  %v832_v47 = vmul.f32 0.5, %v2154_v61 }
 0x130   : > { %1743 = vmatprep.mubr.msk.bf16.mxu0 %vm1185_vm1, %v1138_v36  ;;  %v1714_v7 = vpop.f32.mrf.mxu1  ;;  %1882 = vtanh.f32 %v995_v37  ;;  %v966_v5 = vadd.f32 %v934_v62, %v2283_v51  ;;  %v830_v14 = vmul.f32 0.5, %v2164_v2  ;;  %v935_v44 = vmul.f32 %v903_v12, %v2363_v60 }
 0x131   : > { %v1871_v40 = vpop.eup %1870  ;;  %1884 = vtanh.f32 %v1000_v50  ;;  %v969_v10 = vadd.f32 %v937_v32, %v2322_v9  ;;  %v833_v49 = vmul.f32 0.5, %v2191_v26  ;;  %v831_v21 = vmul.f32 0.5, %v2681_v28 }
 0x132   : > { %v1873_v33 = vpop.eup %1872  ;;  %1744 = vmatmul.mubr.msk.bf16.gmra.mxu0 %vm1185_vm1, %v1139_v18  ;;  %v1054_v16 = vadd.f32 1.0, %v1871_v40  ;;  %v782_v35 = vpop.f32.mrf.mxu1  ;;  %v998_v1 = vmul.f32 0.7978846, %v966_v5  ;;  %v1056_v58 = vadd.f32 1.0, %v1869_v38  ;;  %v775_v13 = vadd.f32 %v2439_v59, %v2316_v46 }
 0x133   : > { %v1057_v24 = vadd.f32 1.0, %v1873_v33  ;;  %v1001_v30 = vmul.f32 0.7978846, %v969_v10  ;;  %v967_v2 = vadd.f32 %v935_v44, %v2363_v60  ;;  %v764_v39 = vadd.f32 %v2316_v46, %v2435_v45 }
 0x134   : > { %v767_v55 = vadd.f32 %v2316_v46, %v2446_v29  ;;  %1886 = vtanh.f32 %v998_v1  ;;  %v772_v26 = vadd.f32 %v2428_v42, %v2316_v46  ;;  %v1086_v0 = vmul.f32 %v1054_v16, %v830_v14  ;;  %v1717_v59 = vpop.f32.mrf.mxu1 }
 0x135   : > { %v1875_v61 = vpop.eup %1874  ;;  %v1089_v28 = vmul.f32 %v1057_v24, %v833_v49  ;;  %1888 = vtanh.f32 %v1001_v30  ;;  %v999_v56 = vmul.f32 0.7978846, %v967_v2  ;;  %v1088_v52 = vmul.f32 %v1056_v58, %v832_v47 }
 0x136   : > { %v1055_v22 = vadd.f32 1.0, %v1875_v61  ;;  %v1118_v34 = vmul.f32 %v1086_v0, %v764_v39  ;;  %v788_v29 = vadd.f32 %v2454_v41, %v2316_v46  ;;  %v836_v53 = vmul.f32 0.5, %v2683_v4  ;;  %v795_v48 = vpop.f32.mrf.mxu1 }
 0x137   : > { %v1121_v27 = vmul.f32 %v1089_v28, %v775_v13  ;;  %1890 = vtanh.f32 %v999_v56  ;;  %v1120_v54 = vmul.f32 %v1088_v52, %v772_v26  ;;  %v791_v43 = vadd.f32 %v1714_v7, %v2316_v46 }
 0x138   : > { %v1087_v23 = vmul.f32 %v1055_v22, %v831_v21  ;;  %v837_v20 = vmul.f32 0.5, %v2687_v8  ;;  %v780_v50 = vadd.f32 %v2316_v46, %v2465_v25  ;;  %v834_v41 = vmul.f32 0.5, %v2685_v57  ;;  %v1718_v25 = vpop.f32.mrf.mxu1 }
 0x139   : > { %v1877_v17 = vpop.eup %1876  ;;  %v1141_v11 = vpack.c.bf16 %v1121_v27, %v1120_v54  ;;  %v835_v4 = vmul.f32 0.5, %v2691_v6  ;;  %v783_v8 = vadd.f32 %v2316_v46, %v782_v35  ;;  %v804_v40 = vadd.f32 %v1717_v59, %v2316_v46 }
 0x13a   : > { %v1119_v45 = vmul.f32 %v1087_v23, %v767_v55  ;;  %v1879_v15 = vpop.eup %1878  ;;  %v1060_v42 = vadd.f32 1.0, %v1877_v17  ;;  %v840_v32 = vmul.f32 0.5, %v2693_v31  ;;  %v796_v21 = vadd.f32 %v2316_v46, %v795_v48  ;;  %v798_v61 = vpop.f32.mrf.mxu1 }
 0x13b   : > { %v1881_v3 = vpop.eup %1880  ;;  %v1058_v36 = vadd.f32 1.0, %v1879_v15  ;;  %v838_v35 = vmul.f32 0.5, %v2283_v51  ;;  %v807_v31 = vadd.f32 %v1718_v25, %v2316_v46  ;;  %v841_v13 = vmul.f32 0.5, %v2322_v9 }
 0x13c   : > { %v1140_v63 = vpack.c.bf16 %v1119_v45, %v1118_v34  ;;  %v1092_v19 = vmul.f32 %v1060_v42, %v836_v53  ;;  %v1061_v12 = vadd.f32 1.0, %v1881_v3  ;;  %v799_v22 = vadd.f32 %v2316_v46, %v798_v61  ;;  %v2524_v46 = vld [vmem:[%s2649_s6] ss:$0 sm:$0xff] }
 0x13d   : > { %v1883_v37 = vpop.eup %1882  ;;  %v1090_v47 = vmul.f32 %v1058_v36, %v834_v41  ;;  %v839_v26 = vmul.f32 0.5, %v2363_v60 }
 0x13e   : > { %1747 = vmatprep.mubr.msk.bf16.mxu0 %vm1185_vm1, %v1140_v63  ;;  %v1885_v38 = vpop.eup %1884  ;;  %v1124_v18 = vmul.f32 %v1092_v19, %v788_v29  ;;  %v1093_v7 = vmul.f32 %v1061_v12, %v837_v20  ;;  %v1059_v62 = vadd.f32 1.0, %v1883_v37 }
 0x13f   : > { %1748 = vmatmul.mubr.msk.bf16.gmra.mxu0 %vm1185_vm1, %v1141_v11  ;;  %v1064_v33 = vadd.f32 1.0, %v1885_v38  ;;  %v1122_v6 = vmul.f32 %v1090_v47, %v780_v50 }
 0x140   : > { %v1125_v57 = vmul.f32 %v1093_v7, %v791_v43  ;;  %v1091_v5 = vmul.f32 %v1059_v62, %v835_v4 }
 0x141   : > { %v1096_v14 = vmul.f32 %v1064_v33, %v840_v32  ;;  %v1887_v24 = vpop.eup %1886 }
 0x142   : > { %v1143_v10 = vpack.c.bf16 %v1125_v57, %v1124_v18  ;;  %v1123_v44 = vmul.f32 %v1091_v5, %v783_v8  ;;  %v1889_v16 = vpop.eup %1888  ;;  %v1062_v1 = vadd.f32 1.0, %v1887_v24 }
 0x143   : > { %v1128_v49 = vmul.f32 %v1096_v14, %v804_v40  ;;  %v1065_v30 = vadd.f32 1.0, %v1889_v16 }
 0x144   : > { %v1142_v58 = vpack.c.bf16 %v1123_v44, %v1122_v6  ;;  %v1891_v2 = vpop.eup %1890  ;;  %v1094_v39 = vmul.f32 %v1062_v1, %v838_v35 }
 0x145   : > { %v1097_v55 = vmul.f32 %v1065_v30, %v841_v13  ;;  %v1063_v51 = vadd.f32 1.0, %v1891_v2 }
 0x146   : > { %1751 = vmatprep.mubr.msk.bf16.mxu0 %vm1185_vm1, %v1142_v58  ;;  %v1126_v28 = vmul.f32 %v1094_v39, %v796_v21 }
 0x147   : > { %1752 = vmatmul.mubr.msk.bf16.gmra.mxu0 %vm1185_vm1, %v1143_v10  ;;  %v1129_v56 = vmul.f32 %v1097_v55, %v807_v31  ;;  %v1095_v0 = vmul.f32 %v1063_v51, %v839_v26 }
 0x149   : > { %v1145_v23 = vpack.c.bf16 %v1129_v56, %v1128_v49  ;;  %v1127_v9 = vmul.f32 %v1095_v0, %v799_v22 }
 0x14b   : > { %v1144_v59 = vpack.c.bf16 %v1127_v9, %v1126_v28 }
 0x14d   : > { %1755 = vmatprep.mubr.msk.bf16.mxu0 %vm1185_vm1, %v1144_v59 }
 0x14f   : > { %1756 = vmatmul.mubr.msk.bf16.gmra.mxu0 %vm1185_vm1, %v1145_v23 }
 0x1ca   : > { %v1729_v60 = vpop.f32.mrf.mxu0 }
 0x1cb   : > { %v1277_v52 = vadd.f32 %v1729_v60, %v2524_v46 }
 0x1cc   : > { %v1268_v27 = vpop.f32.mrf.mxu0 }
 0x1cd   : > { %1397 = vst [vmem:[%s2527_s14 + $0x10] sm:$0xff] %v1277_v52  ;;  %v1269_v17 = vadd.f32 %v2524_v46, %v1268_v27 }
 0x1ce   : > { %v1730_v34 = vpop.f32.mrf.mxu0 }
 0x1cf   : > { %1395 = vst [vmem:[%s2527_s14] sm:$0xff] %v1269_v17  ;;  %v1280_v45 = vadd.f32 %v1730_v34, %v2524_v46 }
 0x1d0   : > { %v1271_v15 = vpop.f32.mrf.mxu0 }
 0x1d1   : > { %1398 = vst [vmem:[%s2527_s14 + $0x18] sm:$0xff] %v1280_v45  ;;  %v1272_v54 = vadd.f32 %v2524_v46, %v1271_v15 }
 0x1d3   : > { %1396 = vst [vmem:[%s2527_s14 + $0x8] sm:$0xff] %v1272_v54 }
 0x1da   : > { %v1733_v29 = vpop.f32.mrf.mxu0 }
 0x1db   : > { %v1293_v53 = vadd.f32 %v1733_v29, %v2524_v46 }
 0x1dc   : > { %v1284_v42 = vpop.f32.mrf.mxu0 }
 0x1dd   : > { %1401 = vst [vmem:[%s2527_s14 + $0x30] sm:$0xff] %v1293_v53  ;;  %v1285_v3 = vadd.f32 %v2524_v46, %v1284_v42 }
 0x1de   : > { %v1734_v63 = vpop.f32.mrf.mxu0 }
 0x1df   : > { %1399 = vst [vmem:[%s2527_s14 + $0x20] sm:$0xff] %v1285_v3  ;;  %v1296_v43 = vadd.f32 %v1734_v63, %v2524_v46 }
 0x1e0   : > { %v1287_v20 = vpop.f32.mrf.mxu0 }
 0x1e1   : > { %1402 = vst [vmem:[%s2527_s14 + $0x38] sm:$0xff] %v1296_v43  ;;  %v1288_v48 = vadd.f32 %v2524_v46, %v1287_v20 }
 0x1e2   : > { %v1737_v11 = vpop.f32.mrf.mxu0 }
 0x1e3   : > { %1400 = vst [vmem:[%s2527_s14 + $0x28] sm:$0xff] %v1288_v48  ;;  %v1309_v19 = vadd.f32 %v1737_v11, %v2524_v46 }
 0x1e4   : > { %v1300_v36 = vpop.f32.mrf.mxu0 }
 0x1e5   : > { %1405 = vst [vmem:[%s2527_s14 + $0x50] sm:$0xff] %v1309_v19  ;;  %v1301_v12 = vadd.f32 %v2524_v46, %v1300_v36 }
 0x1e6   : > { %v1738_v37 = vpop.f32.mrf.mxu0 }
 0x1e7   : > { %1403 = vst [vmem:[%s2527_s14 + $0x40] sm:$0xff] %v1301_v12  ;;  %v1312_v50 = vadd.f32 %v1738_v37, %v2524_v46 }
 0x1e8   : > { %v1303_v41 = vpop.f32.mrf.mxu0 }
 0x1e9   : > { %1406 = vst [vmem:[%s2527_s14 + $0x58] sm:$0xff] %v1312_v50  ;;  %v1304_v4 = vadd.f32 %v2524_v46, %v1303_v41 }
 0x1ea   : > { %v1741_v38 = vpop.f32.mrf.mxu0 }
 0x1eb   : > { %1404 = vst [vmem:[%s2527_s14 + $0x48] sm:$0xff] %v1304_v4  ;;  %v1325_v18 = vadd.f32 %v1741_v38, %v2524_v46 }
 0x1ec   : > { %v1316_v7 = vpop.f32.mrf.mxu0 }
 0x1ed   : > { %1409 = vst [vmem:[%s2527_s14 + $0x70] sm:$0xff] %v1325_v18  ;;  %v1317_v8 = vadd.f32 %v2524_v46, %v1316_v7 }
 0x1ee   : > { %v1742_v62 = vpop.f32.mrf.mxu0 }
 0x1ef   : > { %1407 = vst [vmem:[%s2527_s14 + $0x60] sm:$0xff] %v1317_v8  ;;  %v1328_v40 = vadd.f32 %v1742_v62, %v2524_v46 }
 0x1f0   : > { %v1319_v32 = vpop.f32.mrf.mxu0 }
 0x1f1   : > { %1410 = vst [vmem:[%s2527_s14 + $0x78] sm:$0xff] %v1328_v40  ;;  %v1320_v33 = vadd.f32 %v2524_v46, %v1319_v32 }
 0x1f2   : > { %v1745_v25 = vpop.f32.mrf.mxu0 }
 0x1f3   : > { %1408 = vst [vmem:[%s2527_s14 + $0x68] sm:$0xff] %v1320_v33  ;;  %v1341_v47 = vadd.f32 %v1745_v25, %v2524_v46 }
 0x1f4   : > { %v1332_v57 = vpop.f32.mrf.mxu0 }
 0x1f5   : > { %1413 = vst [vmem:[%s2527_s14 + $0x90] sm:$0xff] %v1341_v47  ;;  %v1333_v5 = vadd.f32 %v2524_v46, %v1332_v57 }
 0x1f6   : > { %v1746_v14 = vpop.f32.mrf.mxu0 }
 0x1f7   : > { %1411 = vst [vmem:[%s2527_s14 + $0x80] sm:$0xff] %v1333_v5  ;;  %v1344_v24 = vadd.f32 %v1746_v14, %v2524_v46 }
 0x1f8   : > { %v1335_v6 = vpop.f32.mrf.mxu0 }
 0x1f9   : > { %1414 = vst [vmem:[%s2527_s14 + $0x98] sm:$0xff] %v1344_v24  ;;  %v1336_v10 = vadd.f32 %v2524_v46, %v1335_v6 }
 0x1fb   : > { %1412 = vst [vmem:[%s2527_s14 + $0x88] sm:$0xff] %v1336_v10 }
 0x1ff   : > { %v1749_v44 = vpop.f32.mrf.mxu0 }
 0x200   : > { %v1357_v16 = vadd.f32 %v1749_v44, %v2524_v46 }
 0x201   : > { %v1348_v49 = vpop.f32.mrf.mxu0 }
 0x202   : > { %1417 = vst [vmem:[%s2527_s14 + $0xb0] sm:$0xff] %v1357_v16  ;;  %v1349_v21 = vadd.f32 %v2524_v46, %v1348_v49 }
 0x203   : > { %v1750_v35 = vpop.f32.mrf.mxu0 }
 0x204   : > { %1415 = vst [vmem:[%s2527_s14 + $0xa0] sm:$0xff] %v1349_v21  ;;  %v1360_v1 = vadd.f32 %v1750_v35, %v2524_v46 }
 0x205   : > { %v1351_v61 = vpop.f32.mrf.mxu0 }
 0x206   : > { %1418 = vst [vmem:[%s2527_s14 + $0xb8] sm:$0xff] %v1360_v1  ;;  %v1352_v58 = vadd.f32 %v2524_v46, %v1351_v61 }
 0x207   : > { %v1753_v31 = vpop.f32.mrf.mxu0 }
 0x208   : > { %1416 = vst [vmem:[%s2527_s14 + $0xa8] sm:$0xff] %v1352_v58  ;;  %v1373_v13 = vadd.f32 %v1753_v31, %v2524_v46 }
 0x209   : > { %v1364_v30 = vpop.f32.mrf.mxu0 }
 0x20a   : > { %1421 = vst [vmem:[%s2527_s14 + $0xd0] sm:$0xff] %v1373_v13  ;;  %v1365_v2 = vadd.f32 %v2524_v46, %v1364_v30 }
 0x20b   : > { %v1754_v39 = vpop.f32.mrf.mxu0 }
 0x20c   : > { %1419 = vst [vmem:[%s2527_s14 + $0xc0] sm:$0xff] %v1365_v2  ;;  %v1376_v55 = vadd.f32 %v1754_v39, %v2524_v46 }
 0x20d   : > { %v1367_v22 = vpop.f32.mrf.mxu0 }
 0x20e   : > { %1422 = vst [vmem:[%s2527_s14 + $0xd8] sm:$0xff] %v1376_v55  ;;  %v1368_v26 = vadd.f32 %v2524_v46, %v1367_v22 }
 0x20f   : > { %v1757_v51 = vpop.f32.mrf.mxu0 }
 0x210   : > { %1420 = vst [vmem:[%s2527_s14 + $0xc8] sm:$0xff] %v1368_v26  ;;  %v1389_v28 = vadd.f32 %v1757_v51, %v2524_v46 }
 0x211   : > { %v1380_v56 = vpop.f32.mrf.mxu0 }
 0x212   : > { %1425 = vst [vmem:[%s2527_s14 + $0xf0] sm:$0xff] %v1389_v28  ;;  %v1381_v0 = vadd.f32 %v2524_v46, %v1380_v56 }
 0x213   : > { %v1758_v23 = vpop.f32.mrf.mxu0 }
 0x214   : > { %1423 = vst [vmem:[%s2527_s14 + $0xe0] sm:$0xff] %v1381_v0  ;;  %v1392_v9 = vadd.f32 %v1758_v23, %v2524_v46 }
 0x215   : > { %v1383_v59 = vpop.f32.mrf.mxu0 }
 0x216   : > { %1426 = vst [vmem:[%s2527_s14 + $0xf8] sm:$0xff] %v1392_v9  ;;  %v1384_v60 = vadd.f32 %v2524_v46, %v1383_v59 }
 0x218   : > { %1424 = vst [vmem:[%s2527_s14 + $0xe8] sm:$0xff] %v1384_v60 }
 0x219   : > { %1905 = shalt.err (!%p1902_p3)
}
 0x21a   : > { %s1906_s29 = scalar_lea.hbm %s2594_s19, 4096  ;;  %s1910_s13 = scalar_lea.hbm %s2650_s7, 8192 }
 0x21b   : > { %p1907_p4 = scmp.ne.s32.totalorder %s2594_s19, %s1906_s29  ;;  %p1911_p9 = scmp.lt.s32.totalorder %s2594_s19, %s2650_s7 }
 0x21c   : > { %p1912_p10 = scmp.lt.s32.totalorder %s1910_s13, %s1906_s29 }
 0x21d   : > { %p1908_p7 = pnand %p1907_p4, %p2035_p5 }
 0x21e   : > { %p1913_p11 = por %p1912_p10, %p1911_p9 }
 0x21f   : > { %p1909_p8 = pneg %p1908_p7 }
 0x221   : > { %p1914_p12 = pnand %p1913_p11, %p1909_p8 }
 0x223   : > { %1917 = shalt.err (!%p1914_p12)
}
 0x224   : > { %s1955_s17 = smov 128   ;;  %s1956_s18 = smov 8  }
 0x225   : > { %1763 = dma.vmem_to_hbm [thread:$0]  (%p2035_p5), %s2596_s16, 4096, %s2594_s19, %s2603_s28, %s1955_s17, %s1955_s17, %s1956_s18  }
 0x226 PF: > { %p1769_p13 = scmp.ge.s32.totalorder %s1952_s27, 2  ;;  %s1456_s20 = sand.u32 1, %s1940_s24  }
 0x227   : > { %s1457_s21 = scalar_lea.sflag [#allocation3], %s1456_s20 }
 0x228   : > { %p1766_p0 = pnand %p1769_p13, %p2039_p6 }
 0x22a   : > { %p1767_p1 = pneg %p1766_p0 }
 0x22c   : > { %1935 = dma.done.wait (%p1767_p1), %s1457_s21, 4096  }
 0x22d   : > { %1937 = vsyncadd (%p1767_p1), %s1457_s21, 4294963200  ;;  %p17_p2 = scmp.ge.s32.totalorder %s2022_s30, 4   ;;  %s2695_s24 = smov %s1944_s25 }
 0x22e   : > { %s2696_s25 = smov %s1948_s26  ;;  %s2697_s26 = smov %s2033_s10 }
 0x22f   : > { %s2698_s27 = smov %s2022_s30  ;;  %19 = sbr.rel (!%p17_p2) target bundleno = 3 (0x3), region = 83 }
 0x234   :  { %1462 = vsyncpa [#allocation3], 1 }
 0x235   :  { %1464 = vsyncpa [#allocation3 + $0x1], 1 }

</bundles_post_ra>
